<compile_context>
chip_gen: v6e
topology: v6e:2x2x1
jax: 0.10.0
libtpu: 0.0.40
codegen_flags: <defaults>
</compile_context>

<pallas_src>
import functools

import jax
import jax.numpy as jnp
from jax import lax
from jax.experimental import pallas as pl
from jax.experimental.pallas import tpu as pltpu

LANES = 128
TM_MAX = 4096    # rows per grid step: 4096 x 128 x f32 = 2 MiB per input block
CHUNK = 256      # rows per in-kernel accumulation chunk (multiple of 8)
NC = 2           # leading grid axis (2-way TensorCore split on v7x)


def _silog_partial_kernel(pred_ref, targ_ref, acc_ref, *,
                          tm, rows, blocks_per_core, needs_tail):
    """Accumulates masked partial sums into a (3, 8, 128) resident output slab.

    acc_ref[0]: per-(sublane, lane) sum of diff_log
    acc_ref[1]: per-(sublane, lane) sum of diff_log^2
    acc_ref[2]: per-(sublane, lane) count of valid elements
    """
    c = pl.program_id(0)
    i = pl.program_id(1)

    @pl.when(i == 0)
    def _():
        acc_ref[...] = jnp.zeros_like(acc_ref)

    n_chunks = tm // CHUNK          # static: tm is always a multiple of CHUNK
    unroll = min(n_chunks, 8)

    def accumulate(masked):
        blk_row0 = (c * blocks_per_core + i) * tm

        def body(ci, carry):
            s_d, s_d2, s_cnt = carry
            r0 = pl.multiple_of(ci * CHUNK, CHUNK)
            p = pred_ref[pl.ds(r0, CHUNK), :].astype(jnp.float32)
            t = targ_ref[pl.ds(r0, CHUNK), :].astype(jnp.float32)
            valid = t > 0.0
            if masked:
                # Only the tail block pays for this: mask rows past the true
                # extent (covers stale VMEM beyond the partial edge DMA).
                row_ids = (blk_row0 + r0
                           + lax.broadcasted_iota(jnp.int32, (CHUNK, LANES), 0))
                valid = jnp.logical_and(valid, row_ids < rows)
            # Keep log() arguments safe on masked-out / undefined elements;
            # log(1/1) == 0 exactly, so no outer select is needed.
            safe_t = jnp.where(valid, t, 1.0)
            safe_p = jnp.where(valid, p, 1.0)
            d = jnp.log(safe_t / safe_p)        # exact divide (not approx recip)
            # (CHUNK,128) -> (CHUNK//8, 8, 128) matches the native f32 tile
            # structure, so the axis-0 sums are pure vreg-wise VPU adds.
            sub = CHUNK // 8
            d3 = d.reshape(sub, 8, LANES)
            c3 = valid.astype(jnp.float32).reshape(sub, 8, LANES)
            return (s_d + jnp.sum(d3, axis=0),
                    s_d2 + jnp.sum(d3 * d3, axis=0),
                    s_cnt + jnp.sum(c3, axis=0))

        init = (jnp.zeros((8, LANES), jnp.float32),
                jnp.zeros((8, LANES), jnp.float32),
                jnp.zeros((8, LANES), jnp.float32))
        s_d, s_d2, s_cnt = lax.fori_loop(0, n_chunks, body, init, unroll=unroll)
        acc_ref[0] += s_d
        acc_ref[1] += s_d2
        acc_ref[2] += s_cnt

    if needs_tail:
        blk = c * blocks_per_core + i           # nominal (unclamped) block id
        row0 = blk * tm
        is_full = row0 + tm <= rows             # block entirely within data
        is_tail = jnp.logical_and(row0 < rows, jnp.logical_not(is_full))

        @pl.when(is_full)
        def _():
            accumulate(masked=False)

        @pl.when(is_tail)
        def _():
            accumulate(masked=True)
        # Dummy blocks (row0 >= rows, clamped in the index_map) skip compute
        # entirely, so the last real block is never double-counted.
    else:
        accumulate(masked=False)


@functools.partial(jax.jit, static_argnames=("lambd",))
def silog_loss(pred, target, lambd=0.5):
    """Scale-invariant log loss; matches SiLogLoss.forward semantics.

    Note: if no target element is > 0, the result is NaN (same as PyTorch,
    where mean() of an empty tensor is NaN).
    """
    assert pred.shape == target.shape

    # Flatten in native dtype (no wrapper-side cast: cast happens in-kernel).
    p = pred.reshape(-1)
    t = target.reshape(-1)
    n = p.shape[0]

    rows = pl.cdiv(n, LANES)
    pad = rows * LANES - n
    if pad:
        # Rare path (only when numel isn't a multiple of 128). Padded target
        # zeros are invalid by construction; padded pred is guarded in-kernel.
        p = jnp.pad(p, (0, pad))
        t = jnp.pad(t, (0, pad))
    p2 = p.reshape(rows, LANES)
    t2 = t.reshape(rows, LANES)

    # Block rows: largest multiple of CHUNK covering the data, capped at TM_MAX.
    if rows >= TM_MAX:
        tm = TM_MAX
    else:
        tm = ((rows + CHUNK - 1) // CHUNK) * CHUNK   # single (partial) block
    nblocks = pl.cdiv(rows, tm)
    nc = min(NC, nblocks)                            # no duplicate DMA when tiny
    bpc = pl.cdiv(nblocks, nc)                       # row-blocks per "core"
    needs_tail = (nc * bpc * tm) != rows

    def in_map(c, i):
        # Clamp: dummy blocks past the end re-point at the last real block
        # (same index as that core's previous step, so the DMA is elided /
        # harmless); their compute is skipped in-kernel.
        return (jnp.minimum(c * bpc + i, nblocks - 1), 0)

    kernel = functools.partial(
        _silog_partial_kernel,
        tm=tm, rows=rows, blocks_per_core=bpc, needs_tail=needs_tail)

    sums = pl.pallas_call(
        kernel,
        out_shape=jax.ShapeDtypeStruct((nc, 3, 8, LANES), jnp.float32),
        grid_spec=pltpu.PrefetchScalarGridSpec(
            num_scalar_prefetch=0,
            grid=(nc, bpc),
            in_specs=[
                pl.BlockSpec((tm, LANES), in_map),
                pl.BlockSpec((tm, LANES), in_map),
            ],
            out_specs=pl.BlockSpec((None, 3, 8, LANES), lambda c, i: (c, 0, 0, 0)),
        ),
        compiler_params=pltpu.CompilerParams(
            dimension_semantics=("parallel", "arbitrary"),
            vmem_limit_bytes=32 * 1024 * 1024),
    )(p2, t2)

    # Tiny final cross-lane / cross-core reduction + sqrt in plain JAX.
    sum_d = jnp.sum(sums[:, 0])
    sum_d2 = jnp.sum(sums[:, 1])
    count = jnp.sum(sums[:, 2])

    mean_d = sum_d / count
    mean_d2 = sum_d2 / count
    var = mean_d2 - lambd * mean_d * mean_d
    # Guard tiny negative values from FP cancellation (would otherwise NaN);
    # identical to the PyTorch result in all non-degenerate cases.
    return jnp.sqrt(jnp.maximum(var, 0.0))


def _silog_ref(pred, target, lambd=0.5):
    """Pure-JAX reference for validation."""
    mask = target > 0.0
    d = jnp.where(mask, jnp.log(jnp.where(mask, target, 1.0))
                  - jnp.log(jnp.where(mask, pred, 1.0)), 0.0)
    cnt = jnp.sum(mask)
    mean_d = jnp.sum(d) / cnt
    mean_d2 = jnp.sum(d * d) / cnt
    return jnp.sqrt(mean_d2 - lambd * mean_d * mean_d)


if __name__ == "__main__":
    key = jax.random.PRNGKey(0)
    k1, k2, k3 = jax.random.split(key, 3)

    # NCHW inputs (saliency/depth-style maps): batch=2, channels=1, 32x32.
    shape = (2, 1, 32, 32)
    pred = jax.random.uniform(k1, shape, jnp.float32, minval=0.05, maxval=1.0)
    raw_t = jax.random.uniform(k2, shape, jnp.float32, minval=0.05, maxval=1.0)
    keep = jax.random.uniform(k3, shape, jnp.float32) > 0.3  # ~30% invalid zeros
    target = jnp.where(keep, raw_t, 0.0)

    loss = silog_loss(pred, target, lambd=0.5)
    jax.block_until_ready(loss)
    ref = _silog_ref(pred, target, lambd=0.5)
    assert jnp.allclose(loss, ref, rtol=1e-5, atol=1e-6), (loss, ref)
    assert loss.shape == ()

    # Larger case: multi-chunk block with an in-kernel ragged tail, no padding.
    shape2 = (1, 1, 1032, 128)  # 132096 elems -> rows=1032, ragged vs CHUNK
    k4, k5, k6 = jax.random.split(jax.random.PRNGKey(1), 3)
    pred2 = jax.random.uniform(k4, shape2, jnp.float32, minval=0.05, maxval=1.0)
    raw2 = jax.random.uniform(k5, shape2, jnp.float32, minval=0.05, maxval=1.0)
    target2 = jnp.where(jax.random.uniform(k6, shape2) > 0.3, raw2, 0.0)

    loss2 = silog_loss(pred2, target2, lambd=0.5)
    jax.block_until_ready(loss2)
    ref2 = _silog_ref(pred2, target2, lambd=0.5)
    assert jnp.allclose(loss2, ref2, rtol=2e-5, atol=1e-6), (loss2, ref2)

    # Unaligned case (numel % 128 != 0) exercising the lane-pad fallback.
    shape3 = (2, 3, 5, 7)  # 210 elems
    k7, k8, k9 = jax.random.split(jax.random.PRNGKey(2), 3)
    pred3 = jax.random.uniform(k7, shape3, jnp.float32, minval=0.05, maxval=1.0)
    raw3 = jax.random.uniform(k8, shape3, jnp.float32, minval=0.05, maxval=1.0)
    target3 = jnp.where(jax.random.uniform(k9, shape3) > 0.3, raw3, 0.0)

    loss3 = silog_loss(pred3, target3, lambd=0.5)
    jax.block_until_ready(loss3)
    ref3 = _silog_ref(pred3, target3, lambd=0.5)
    assert jnp.allclose(loss3, ref3, rtol=1e-5, atol=1e-6), (loss3, ref3)

    print("KERNEL_OK")
</pallas_src>

<mosaic_0001>
module attributes {stable_mosaic.version = 11 : i64} {
  func.func @_silog_partial_kernel(%arg0: i32, %arg1: i32, %arg2: memref<256x128xf32, #tpu.memory_space<vmem>>, %arg3: memref<256x128xf32, #tpu.memory_space<vmem>>, %arg4: memref<1x3x8x128xf32, #tpu.memory_space<vmem>>) attributes {dimension_semantics = [#tpu.dimension_semantics<parallel>, #tpu.dimension_semantics<arbitrary>], iteration_bounds = array<i64: 1, 1>, scalar_prefetch = 0 : i64, scratch_operands = 0 : i64, tpu.core_type = #tpu.core_type<tc>, window_params = [{transform_indices = @transform_0, window_bounds = array<i64: 256, 128>}, {transform_indices = @transform_1, window_bounds = array<i64: 256, 128>}, {transform_indices = @transform_2, window_bounds = array<i64: 1, 3, 8, 128>}]} {
    %c0_i32 = arith.constant 0 : i32
    %0 = arith.cmpi eq, %arg1, %c0_i32 : i32
    %1 = arith.extui %0 : i1 to i32
    %c0_i32_0 = arith.constant 0 : i32
    %2 = arith.cmpi ne, %1, %c0_i32_0 : i32
    scf.if %2 {
      %cst = arith.constant 0.000000e+00 : f32
      %15 = vector.broadcast %cst : f32 to vector<3x8x128xf32>
      %c0 = arith.constant 0 : index
      %c0_5 = arith.constant 0 : index
      %c0_6 = arith.constant 0 : index
      %c0_7 = arith.constant 0 : index
      %16 = vector.load %arg4[%c0, %c0_5, %c0_6, %c0_7] : memref<1x3x8x128xf32, #tpu.memory_space<vmem>>, vector<1x3x8x128xf32>
      %17 = vector.shape_cast %16 : vector<1x3x8x128xf32> to vector<3x8x128xf32>
      %18 = vector.shape_cast %15 : vector<3x8x128xf32> to vector<1x3x8x128xf32>
      tpu.vector_store %arg4[%c0, %c0_5, %c0_6, %c0_7], %18 {strides = array<i32>} : memref<1x3x8x128xf32, #tpu.memory_space<vmem>>, vector<1x3x8x128xf32>,
    } else {
    }
    %c1_i32 = arith.constant 1 : i32
    %3 = arith.muli %arg0, %c1_i32 : i32
    %4 = arith.addi %3, %arg1 : i32
    %c256_i32 = arith.constant 256 : i32
    %5 = arith.muli %4, %c256_i32 : i32
    %c256_i32_1 = arith.constant 256 : i32
    %6 = arith.addi %5, %c256_i32_1 : i32
    %c16_i32 = arith.constant 16 : i32
    %7 = arith.cmpi sle, %6, %c16_i32 : i32
    %c16_i32_2 = arith.constant 16 : i32
    %8 = arith.cmpi slt, %5, %c16_i32_2 : i32
    %true = arith.constant true
    %9 = arith.xori %7, %true : i1
    %10 = arith.andi %8, %9 : i1
    %11 = arith.extui %7 : i1 to i32
    %c0_i32_3 = arith.constant 0 : i32
    %12 = arith.cmpi ne, %11, %c0_i32_3 : i32
    scf.if %12 {
      %cst = arith.constant 0.000000e+00 : f32
      %15 = vector.broadcast %cst : f32 to vector<8x128xf32>
      %cst_5 = arith.constant 0.000000e+00 : f32
      %16 = vector.broadcast %cst_5 : f32 to vector<8x128xf32>
      %cst_6 = arith.constant 0.000000e+00 : f32
      %17 = vector.broadcast %cst_6 : f32 to vector<8x128xf32>
      %c0_i32_7 = arith.constant 0 : i32
      %c256_i32_8 = arith.constant 256 : i32
      %18 = arith.muli %c0_i32_7, %c256_i32_8 : i32
      %19 = tpu.assume_multiple %18, 256 : i32
      %20 = arith.index_cast %19 : i32 to index
      %c0 = arith.constant 0 : index
      %21 = vector.load %arg2[%20, %c0] : memref<256x128xf32, #tpu.memory_space<vmem>>, vector<256x128xf32>
      %22 = arith.index_cast %19 : i32 to index
      %c0_9 = arith.constant 0 : index
      %23 = vector.load %arg3[%22, %c0_9] : memref<256x128xf32, #tpu.memory_space<vmem>>, vector<256x128xf32>
      %cst_10 = arith.constant 0.000000e+00 : f32
      %24 = vector.broadcast %cst_10 : f32 to vector<256x128xf32>
      %25 = arith.cmpf ogt, %23, %24 : vector<256x128xf32>
      %cst_11 = arith.constant 1.000000e+00 : f32
      %26 = vector.broadcast %cst_11 : f32 to vector<256x128xf32>
      %27 = arith.select %25, %23, %26 : vector<256x128xi1>, vector<256x128xf32>
      %cst_12 = arith.constant 1.000000e+00 : f32
      %28 = vector.broadcast %cst_12 : f32 to vector<256x128xf32>
      %29 = arith.select %25, %21, %28 : vector<256x128xi1>, vector<256x128xf32>
      %30 = arith.divf %27, %29 : vector<256x128xf32>
      %31 = math.log %30 : vector<256x128xf32>
      %32 = vector.shape_cast %31 : vector<256x128xf32> to vector<32x8x128xf32>
      %33 = arith.extui %25 : vector<256x128xi1> to vector<256x128xi32>
      %34 = arith.sitofp %33 : vector<256x128xi32> to vector<256x128xf32>
      %35 = vector.shape_cast %34 : vector<256x128xf32> to vector<32x8x128xf32>
      %cst_13 = arith.constant dense<0.000000e+00> : vector<8x128xf32>
      %36 = vector.multi_reduction <add>, %32, %cst_13 [0] : vector<32x8x128xf32> to vector<8x128xf32>
      %37 = arith.addf %15, %36 : vector<8x128xf32>
      %38 = arith.mulf %32, %32 : vector<32x8x128xf32>
      %cst_14 = arith.constant dense<0.000000e+00> : vector<8x128xf32>
      %39 = vector.multi_reduction <add>, %38, %cst_14 [0] : vector<32x8x128xf32> to vector<8x128xf32>
      %40 = arith.addf %16, %39 : vector<8x128xf32>
      %cst_15 = arith.constant dense<0.000000e+00> : vector<8x128xf32>
      %41 = vector.multi_reduction <add>, %35, %cst_15 [0] : vector<32x8x128xf32> to vector<8x128xf32>
      %42 = arith.addf %17, %41 : vector<8x128xf32>
      %c1_i32_16 = arith.constant 1 : i32
      %c0_17 = arith.constant 0 : index
      %c0_18 = arith.constant 0 : index
      %c0_19 = arith.constant 0 : index
      %c0_20 = arith.constant 0 : index
      %43 = vector.load %arg4[%c0_17, %c0_18, %c0_19, %c0_20] : memref<1x3x8x128xf32, #tpu.memory_space<vmem>>, vector<1x1x8x128xf32>
      %44 = vector.shape_cast %43 : vector<1x1x8x128xf32> to vector<8x128xf32>
      %45 = arith.addf %44, %37 : vector<8x128xf32>
      %c0_21 = arith.constant 0 : index
      %c0_22 = arith.constant 0 : index
      %c0_23 = arith.constant 0 : index
      %c0_24 = arith.constant 0 : index
      %46 = vector.load %arg4[%c0_21, %c0_22, %c0_23, %c0_24] : memref<1x3x8x128xf32, #tpu.memory_space<vmem>>, vector<1x1x8x128xf32>
      %47 = vector.shape_cast %46 : vector<1x1x8x128xf32> to vector<8x128xf32>
      %48 = vector.shape_cast %45 : vector<8x128xf32> to vector<1x1x8x128xf32>
      tpu.vector_store %arg4[%c0_21, %c0_22, %c0_23, %c0_24], %48 {strides = array<i32>} : memref<1x3x8x128xf32, #tpu.memory_space<vmem>>, vector<1x1x8x128xf32>,
      %c0_25 = arith.constant 0 : index
      %c1 = arith.constant 1 : index
      %c0_26 = arith.constant 0 : index
      %c0_27 = arith.constant 0 : index
      %49 = vector.load %arg4[%c0_25, %c1, %c0_26, %c0_27] : memref<1x3x8x128xf32, #tpu.memory_space<vmem>>, vector<1x1x8x128xf32>
      %50 = vector.shape_cast %49 : vector<1x1x8x128xf32> to vector<8x128xf32>
      %51 = arith.addf %50, %40 : vector<8x128xf32>
      %c0_28 = arith.constant 0 : index
      %c1_29 = arith.constant 1 : index
      %c0_30 = arith.constant 0 : index
      %c0_31 = arith.constant 0 : index
      %52 = vector.load %arg4[%c0_28, %c1_29, %c0_30, %c0_31] : memref<1x3x8x128xf32, #tpu.memory_space<vmem>>, vector<1x1x8x128xf32>
      %53 = vector.shape_cast %52 : vector<1x1x8x128xf32> to vector<8x128xf32>
      %54 = vector.shape_cast %51 : vector<8x128xf32> to vector<1x1x8x128xf32>
      tpu.vector_store %arg4[%c0_28, %c1_29, %c0_30, %c0_31], %54 {strides = array<i32>} : memref<1x3x8x128xf32, #tpu.memory_space<vmem>>, vector<1x1x8x128xf32>,
      %c0_32 = arith.constant 0 : index
      %c2 = arith.constant 2 : index
      %c0_33 = arith.constant 0 : index
      %c0_34 = arith.constant 0 : index
      %55 = vector.load %arg4[%c0_32, %c2, %c0_33, %c0_34] : memref<1x3x8x128xf32, #tpu.memory_space<vmem>>, vector<1x1x8x128xf32>
      %56 = vector.shape_cast %55 : vector<1x1x8x128xf32> to vector<8x128xf32>
      %57 = arith.addf %56, %42 : vector<8x128xf32>
      %c0_35 = arith.constant 0 : index
      %c2_36 = arith.constant 2 : index
      %c0_37 = arith.constant 0 : index
      %c0_38 = arith.constant 0 : index
      %58 = vector.load %arg4[%c0_35, %c2_36, %c0_37, %c0_38] : memref<1x3x8x128xf32, #tpu.memory_space<vmem>>, vector<1x1x8x128xf32>
      %59 = vector.shape_cast %58 : vector<1x1x8x128xf32> to vector<8x128xf32>
      %60 = vector.shape_cast %57 : vector<8x128xf32> to vector<1x1x8x128xf32>
      tpu.vector_store %arg4[%c0_35, %c2_36, %c0_37, %c0_38], %60 {strides = array<i32>} : memref<1x3x8x128xf32, #tpu.memory_space<vmem>>, vector<1x1x8x128xf32>,
    } else {
    }
    %13 = arith.extui %10 : i1 to i32
    %c0_i32_4 = arith.constant 0 : i32
    %14 = arith.cmpi ne, %13, %c0_i32_4 : i32
    scf.if %14 {
      %c1_i32_5 = arith.constant 1 : i32
      %15 = arith.muli %arg0, %c1_i32_5 : i32
      %16 = arith.addi %15, %arg1 : i32
      %c256_i32_6 = arith.constant 256 : i32
      %17 = arith.muli %16, %c256_i32_6 : i32
      %cst = arith.constant 0.000000e+00 : f32
      %18 = vector.broadcast %cst : f32 to vector<8x128xf32>
      %cst_7 = arith.constant 0.000000e+00 : f32
      %19 = vector.broadcast %cst_7 : f32 to vector<8x128xf32>
      %cst_8 = arith.constant 0.000000e+00 : f32
      %20 = vector.broadcast %cst_8 : f32 to vector<8x128xf32>
      %c0_i32_9 = arith.constant 0 : i32
      %c256_i32_10 = arith.constant 256 : i32
      %21 = arith.muli %c0_i32_9, %c256_i32_10 : i32
      %22 = tpu.assume_multiple %21, 256 : i32
      %23 = arith.index_cast %22 : i32 to index
      %c0 = arith.constant 0 : index
      %24 = vector.load %arg2[%23, %c0] : memref<256x128xf32, #tpu.memory_space<vmem>>, vector<256x128xf32>
      %25 = arith.index_cast %22 : i32 to index
      %c0_11 = arith.constant 0 : index
      %26 = vector.load %arg3[%25, %c0_11] : memref<256x128xf32, #tpu.memory_space<vmem>>, vector<256x128xf32>
      %cst_12 = arith.constant 0.000000e+00 : f32
      %27 = vector.broadcast %cst_12 : f32 to vector<256x128xf32>
      %28 = arith.cmpf ogt, %26, %27 : vector<256x128xf32>
      %29 = arith.addi %17, %22 : i32
      %30 = tpu.iota {dimensions = array<i32: 0>} : vector<256x128xi32>
      %31 = vector.broadcast %29 : i32 to vector<256x128xi32>
      %32 = arith.addi %31, %30 : vector<256x128xi32>
      %c16_i32_13 = arith.constant 16 : i32
      %33 = vector.broadcast %c16_i32_13 : i32 to vector<256x128xi32>
      %34 = arith.cmpi slt, %32, %33 : vector<256x128xi32>
      %35 = arith.andi %28, %34 : vector<256x128xi1>
      %cst_14 = arith.constant 1.000000e+00 : f32
      %36 = vector.broadcast %cst_14 : f32 to vector<256x128xf32>
      %37 = arith.select %35, %26, %36 : vector<256x128xi1>, vector<256x128xf32>
      %cst_15 = arith.constant 1.000000e+00 : f32
      %38 = vector.broadcast %cst_15 : f32 to vector<256x128xf32>
      %39 = arith.select %35, %24, %38 : vector<256x128xi1>, vector<256x128xf32>
      %40 = arith.divf %37, %39 : vector<256x128xf32>
      %41 = math.log %40 : vector<256x128xf32>
      %42 = vector.shape_cast %41 : vector<256x128xf32> to vector<32x8x128xf32>
      %43 = arith.extui %35 : vector<256x128xi1> to vector<256x128xi32>
      %44 = arith.sitofp %43 : vector<256x128xi32> to vector<256x128xf32>
      %45 = vector.shape_cast %44 : vector<256x128xf32> to vector<32x8x128xf32>
      %cst_16 = arith.constant dense<0.000000e+00> : vector<8x128xf32>
      %46 = vector.multi_reduction <add>, %42, %cst_16 [0] : vector<32x8x128xf32> to vector<8x128xf32>
      %47 = arith.addf %18, %46 : vector<8x128xf32>
      %48 = arith.mulf %42, %42 : vector<32x8x128xf32>
      %cst_17 = arith.constant dense<0.000000e+00> : vector<8x128xf32>
      %49 = vector.multi_reduction <add>, %48, %cst_17 [0] : vector<32x8x128xf32> to vector<8x128xf32>
      %50 = arith.addf %19, %49 : vector<8x128xf32>
      %cst_18 = arith.constant dense<0.000000e+00> : vector<8x128xf32>
      %51 = vector.multi_reduction <add>, %45, %cst_18 [0] : vector<32x8x128xf32> to vector<8x128xf32>
      %52 = arith.addf %20, %51 : vector<8x128xf32>
      %c1_i32_19 = arith.constant 1 : i32
      %c0_20 = arith.constant 0 : index
      %c0_21 = arith.constant 0 : index
      %c0_22 = arith.constant 0 : index
      %c0_23 = arith.constant 0 : index
      %53 = vector.load %arg4[%c0_20, %c0_21, %c0_22, %c0_23] : memref<1x3x8x128xf32, #tpu.memory_space<vmem>>, vector<1x1x8x128xf32>
      %54 = vector.shape_cast %53 : vector<1x1x8x128xf32> to vector<8x128xf32>
      %55 = arith.addf %54, %47 : vector<8x128xf32>
      %c0_24 = arith.constant 0 : index
      %c0_25 = arith.constant 0 : index
      %c0_26 = arith.constant 0 : index
      %c0_27 = arith.constant 0 : index
      %56 = vector.load %arg4[%c0_24, %c0_25, %c0_26, %c0_27] : memref<1x3x8x128xf32, #tpu.memory_space<vmem>>, vector<1x1x8x128xf32>
      %57 = vector.shape_cast %56 : vector<1x1x8x128xf32> to vector<8x128xf32>
      %58 = vector.shape_cast %55 : vector<8x128xf32> to vector<1x1x8x128xf32>
      tpu.vector_store %arg4[%c0_24, %c0_25, %c0_26, %c0_27], %58 {strides = array<i32>} : memref<1x3x8x128xf32, #tpu.memory_space<vmem>>, vector<1x1x8x128xf32>,
      %c0_28 = arith.constant 0 : index
      %c1 = arith.constant 1 : index
      %c0_29 = arith.constant 0 : index
      %c0_30 = arith.constant 0 : index
      %59 = vector.load %arg4[%c0_28, %c1, %c0_29, %c0_30] : memref<1x3x8x128xf32, #tpu.memory_space<vmem>>, vector<1x1x8x128xf32>
      %60 = vector.shape_cast %59 : vector<1x1x8x128xf32> to vector<8x128xf32>
      %61 = arith.addf %60, %50 : vector<8x128xf32>
      %c0_31 = arith.constant 0 : index
      %c1_32 = arith.constant 1 : index
      %c0_33 = arith.constant 0 : index
      %c0_34 = arith.constant 0 : index
      %62 = vector.load %arg4[%c0_31, %c1_32, %c0_33, %c0_34] : memref<1x3x8x128xf32, #tpu.memory_space<vmem>>, vector<1x1x8x128xf32>
      %63 = vector.shape_cast %62 : vector<1x1x8x128xf32> to vector<8x128xf32>
      %64 = vector.shape_cast %61 : vector<8x128xf32> to vector<1x1x8x128xf32>
      tpu.vector_store %arg4[%c0_31, %c1_32, %c0_33, %c0_34], %64 {strides = array<i32>} : memref<1x3x8x128xf32, #tpu.memory_space<vmem>>, vector<1x1x8x128xf32>,
      %c0_35 = arith.constant 0 : index
      %c2 = arith.constant 2 : index
      %c0_36 = arith.constant 0 : index
      %c0_37 = arith.constant 0 : index
      %65 = vector.load %arg4[%c0_35, %c2, %c0_36, %c0_37] : memref<1x3x8x128xf32, #tpu.memory_space<vmem>>, vector<1x1x8x128xf32>
      %66 = vector.shape_cast %65 : vector<1x1x8x128xf32> to vector<8x128xf32>
      %67 = arith.addf %66, %52 : vector<8x128xf32>
      %c0_38 = arith.constant 0 : index
      %c2_39 = arith.constant 2 : index
      %c0_40 = arith.constant 0 : index
      %c0_41 = arith.constant 0 : index
      %68 = vector.load %arg4[%c0_38, %c2_39, %c0_40, %c0_41] : memref<1x3x8x128xf32, #tpu.memory_space<vmem>>, vector<1x1x8x128xf32>
      %69 = vector.shape_cast %68 : vector<1x1x8x128xf32> to vector<8x128xf32>
      %70 = vector.shape_cast %67 : vector<8x128xf32> to vector<1x1x8x128xf32>
      tpu.vector_store %arg4[%c0_38, %c2_39, %c0_40, %c0_41], %70 {strides = array<i32>} : memref<1x3x8x128xf32, #tpu.memory_space<vmem>>, vector<1x1x8x128xf32>,
    } else {
    }
    return
  }
  func.func @transform_0(%arg0: i32, %arg1: i32) -> (i32, i32) {
    %c1_i32 = arith.constant 1 : i32
    %0 = arith.muli %arg0, %c1_i32 : i32
    %1 = arith.addi %0, %arg1 : i32
    %c0_i32 = arith.constant 0 : i32
    %2 = arith.minsi %1, %c0_i32 : i32
    %c0_i32_0 = arith.constant 0 : i32
    %c0_i32_1 = arith.constant 0 : i32
    return %2, %c0_i32_0 : i32, i32
  }
  func.func @transform_1(%arg0: i32, %arg1: i32) -> (i32, i32) {
    %c1_i32 = arith.constant 1 : i32
    %0 = arith.muli %arg0, %c1_i32 : i32
    %1 = arith.addi %0, %arg1 : i32
    %c0_i32 = arith.constant 0 : i32
    %2 = arith.minsi %1, %c0_i32 : i32
    %c0_i32_0 = arith.constant 0 : i32
    %c0_i32_1 = arith.constant 0 : i32
    return %2, %c0_i32_0 : i32, i32
  }
  func.func @transform_2(%arg0: i32, %arg1: i32) -> (i32, i32, i32, i32) {
    %c0_i32 = arith.constant 0 : i32
    %c0_i32_0 = arith.constant 0 : i32
    %c0_i32_1 = arith.constant 0 : i32
    %c0_i32_2 = arith.constant 0 : i32
    return %arg0, %c0_i32, %c0_i32_0, %c0_i32_1 : i32, i32, i32, i32
  }
}

</mosaic_0001>

<bundles_post_ra>
// kernel: silog_loss.1
= control target key start
LH: loop header
LB: loop body
LE: loop exit
PB: predicated region body
PF: predicated region fallthrough
CT: control target
= control target key end

     0   :  { %v1295_v5 = vmov 0.0   ;;  %s1332_s0 = inlined_call_operand.vmem [shape: f32[16,128], index: 0, kind: input, shape index: {}]   ;;  %s1333_s1 = inlined_call_operand.vmem [shape: f32[16,128], index: 1, kind: input, shape index: {}]   ;;  %s1334_s2 = inlined_call_operand.vmem [shape: f32[1,3,8,128], index: 2, kind: output, shape index: {}]  }
   0x1   :  { %v606_v0 = vld [vmem:[%s1332_s0] sm:$0xff]  ;;  %v607_v1 = vld [vmem:[%s1332_s0 + $0x8] sm:$0xff] }
   0x2   :  { %v638_v2 = vld [vmem:[%s1333_s1] sm:$0xff]  ;;  %v639_v3 = vld [vmem:[%s1333_s1 + $0x8] sm:$0xff] }
   0x3   :  { %vm670_vm0 = vcmp.gt.f32.partialorder %v638_v2, 0.0  ;;  %vm671_vm1 = vcmp.gt.f32.partialorder %v639_v3, 0.0 }
   0x4   :  { %v865_v4 = vsel %vm670_vm0, %v606_v0, 1.0  ;;  %v1280_v6 = vsel %vm670_vm0, 1.0, %v1295_v5  ;;  %v866_v7 = vsel %vm671_vm1, %v607_v1, 1.0  ;;  %v1281_v8 = vsel %vm671_vm1, 1.0, %v1295_v5 }
   0x5   :  { %1287 = vrcp.f32 %v865_v4  ;;  %v1185_v9 = vadd.f32 %v1281_v8, %v1280_v6  ;;  %v833_v10 = vsel %vm670_vm0, %v638_v2, 1.0  ;;  %v834_v11 = vsel %vm671_vm1, %v639_v3, 1.0 }
   0x6   :  { %1289 = vrcp.f32 %v866_v7 }
   0x7   :  { %1285 = vst [vmem:[%s1334_s2 + $0x10] sm:$0xff] %v1185_v9 }
  0x12   :  { %v1288_v12 = vpop.eup %1287 }
  0x13   :  { %v1290_v13 = vpop.eup %1289  ;;  %v898_v14 = vmul.f32 %v1288_v12, %v833_v10 }
  0x14   :  { %v900_v15 = vmul.f32 %v1290_v13, %v834_v11 }
  0x15   :  { %1291 = vlog2.f32 %v898_v14 }
  0x16   :  { %1293 = vlog2.f32 %v900_v15 }
  0x22   :  { %v1292_v16 = vpop.eup %1291 }
  0x23   :  { %v1294_v17 = vpop.eup %1293  ;;  %v962_v18 = vmul.f32 0.6931472, %v1292_v16 }
  0x24   :  { %v964_v19 = vmul.f32 0.6931472, %v1294_v17 }
  0x25   :  { %v1121_v20 = vmul.f32 %v962_v18, %v962_v18 }
  0x26   :  { %v1089_v21 = vadd.f32 %v964_v19, %v962_v18  ;;  %v1122_v22 = vmul.f32 %v964_v19, %v964_v19 }
  0x28   :  { %v1153_v23 = vadd.f32 %v1122_v22, %v1121_v20  ;;  %1219 = vst [vmem:[%s1334_s2] sm:$0xff] %v1089_v21 }
  0x2a   :  { %1283 = vst [vmem:[%s1334_s2 + $0x8] sm:$0xff] %v1153_v23 }

</bundles_post_ra>
